<compile_context>
chip_gen: v6e
topology: v6e:2x2x1
jax: 0.10.0
libtpu: 0.0.40
codegen_flags: <defaults>
</compile_context>

<pallas_src>
import functools

import jax
import jax.numpy as jnp
from jax.experimental import pallas as pl
from jax.experimental.pallas import tpu as pltpu


def _channel_attention_kernel(x_ref, w1t_ref, b1_ref, w2t_ref, b2_ref, o_ref,
                              *, inv_hw):
    # x_ref / o_ref block: (Nb, C, HWp). Weights full, biases (1, .).

    # ---- AdaptiveAvgPool2d(1): mean over the spatial (lane) axis ----
    # Padded lanes are zero, so dividing the sum by the true HW is exact.
    pooled = jnp.sum(x_ref[...].astype(jnp.float32), axis=2) * inv_hw   # (Nb, C)

    # ---- squeeze: 1x1 conv (== dense over C), then ReLU ----
    h = jnp.dot(pooled, w1t_ref[...], preferred_element_type=jnp.float32)
    h = jnp.maximum(h + b1_ref[...], 0.0)                               # (Nb, Cr)

    # ---- expand: 1x1 conv (== dense over Cr), then sigmoid ----
    s = jnp.dot(h, w2t_ref[...], preferred_element_type=jnp.float32)
    att = jax.nn.sigmoid(s + b2_ref[...])                               # (Nb, C)

    # ---- per-(n, c) scale; re-index x_ref so the load is scheduled per-use ----
    o_ref[...] = x_ref[...] * att[:, :, None].astype(o_ref.dtype)


def _pick_batch_block(n, c, hw_pad, itemsize, target_bytes=2 * 1024 * 1024):
    """Largest Nb (divisor of n) such that the block is ~target_bytes and the
    grid keeps >=2 steps when possible (megacore sharding on v7x)."""
    per_item = c * hw_pad * itemsize
    nb = max(1, min(n, target_bytes // max(per_item, 1)))
    while nb > 1 and n // nb < 2:
        nb -= 1
    while n % nb != 0:
        nb -= 1
    return nb


@jax.jit
def channel_attention(x, w1, b1, w2, b2):
    """x: (N, C, H, W).  w1: (Cr, C), b1: (Cr,), w2: (C, Cr), b2: (C,)."""
    N, C, H, W = x.shape
    Cr = w1.shape[0]
    HW = H * W
    HWp = ((HW + 127) // 128) * 128          # lane-dense (multiple of 128) tiles

    x_flat = x.reshape(N, C, HW)
    if HWp != HW:
        x_flat = jnp.pad(x_flat, ((0, 0), (0, 0), (0, HWp - HW)))

    nb = _pick_batch_block(N, C, HWp, x.dtype.itemsize)
    grid = (N // nb,)

    # Pre-transpose the 1x1-conv weights once so the in-kernel matmuls need no
    # XLU transposes.
    w1t = jnp.asarray(w1.T, jnp.float32)     # (C, Cr)
    w2t = jnp.asarray(w2.T, jnp.float32)     # (Cr, C)
    b1r = jnp.asarray(b1, jnp.float32).reshape(1, Cr)
    b2r = jnp.asarray(b2, jnp.float32).reshape(1, C)

    # in + out double-buffered blocks + tiny weights, with headroom.
    block_bytes = nb * C * HWp * x.dtype.itemsize
    vmem_bytes = 4 * block_bytes + 4 * (2 * C * Cr + C + Cr) + (1 << 20)
    vmem_bytes = int(min(max(vmem_bytes, 4 << 20), 96 << 20))

    kernel = functools.partial(_channel_attention_kernel, inv_hw=1.0 / HW)

    out_flat = pl.pallas_call(
        kernel,
        out_shape=jax.ShapeDtypeStruct((N, C, HWp), x.dtype),
        grid_spec=pltpu.PrefetchScalarGridSpec(
            num_scalar_prefetch=0,
            grid=grid,
            in_specs=[
                pl.BlockSpec((nb, C, HWp), lambda n: (n, 0, 0)),  # x block
                pl.BlockSpec((C, Cr), lambda n: (0, 0)),          # w1^T (full)
                pl.BlockSpec((1, Cr), lambda n: (0, 0)),          # b1
                pl.BlockSpec((Cr, C), lambda n: (0, 0)),          # w2^T (full)
                pl.BlockSpec((1, C), lambda n: (0, 0)),           # b2
            ],
            out_specs=pl.BlockSpec((nb, C, HWp), lambda n: (n, 0, 0)),
        ),
        compiler_params=pltpu.CompilerParams(
            dimension_semantics=("parallel",),
            vmem_limit_bytes=vmem_bytes),
    )(x_flat, w1t, b1r, w2t, b2r)

    out = out_flat[:, :, :HW] if HWp != HW else out_flat
    return out.reshape(N, C, H, W)


def _reference(x, w1, b1, w2, b2):
    """Plain-JAX reference matching the PyTorch module."""
    pooled = jnp.mean(x, axis=(2, 3))                       # (N, C)
    h = jnp.maximum(pooled @ w1.T + b1, 0.0)                # (N, Cr)
    s = jax.nn.sigmoid(h @ w2.T + b2)                       # (N, C)
    return x * s[:, :, None, None]


if __name__ == "__main__":
    # Small shapes consistent with the module: reduction=16 -> C must be >= 16.
    N, C, H, W = 2, 32, 16, 16
    reduction = 16
    Cr = C // reduction

    key = jax.random.PRNGKey(0)
    kx, kw1, kb1, kw2, kb2 = jax.random.split(key, 5)

    x = jax.random.normal(kx, (N, C, H, W), dtype=jnp.float32)
    # Deterministic synthetic parameters (1x1 conv kernels flattened to dense mats).
    w1 = jax.random.normal(kw1, (Cr, C), dtype=jnp.float32) * 0.1   # squeeze.weight (Cr,C,1,1)
    b1 = jax.random.normal(kb1, (Cr,), dtype=jnp.float32) * 0.1     # squeeze.bias
    w2 = jax.random.normal(kw2, (C, Cr), dtype=jnp.float32) * 0.1   # expand.weight (C,Cr,1,1)
    b2 = jax.random.normal(kb2, (C,), dtype=jnp.float32) * 0.1      # expand.bias

    ref = _reference(x, w1, b1, w2, b2)

    out = channel_attention(x, w1, b1, w2, b2)
    out = jax.block_until_ready(out)

    assert out.shape == (N, C, H, W)
    assert jnp.allclose(out, ref, atol=1e-5, rtol=1e-5), "mismatch vs reference"

    print("KERNEL_OK")
</pallas_src>

<mosaic_0001>
module attributes {stable_mosaic.version = 11 : i64} {
  func.func @_channel_attention_kernel(%arg0: i32, %arg1: memref<1x32x256xf32, #tpu.memory_space<vmem>>, %arg2: memref<32x2xf32, #tpu.memory_space<vmem>>, %arg3: memref<1x2xf32, #tpu.memory_space<vmem>>, %arg4: memref<2x32xf32, #tpu.memory_space<vmem>>, %arg5: memref<1x32xf32, #tpu.memory_space<vmem>>, %arg6: memref<1x32x256xf32, #tpu.memory_space<vmem>>) attributes {dimension_semantics = [#tpu.dimension_semantics<parallel>], iteration_bounds = array<i64: 2>, scalar_prefetch = 0 : i64, scratch_operands = 0 : i64, tpu.core_type = #tpu.core_type<tc>, window_params = [{transform_indices = @transform_0, window_bounds = array<i64: 1, 32, 256>}, {pipeline_mode = #tpu.pipeline_mode<synchronous>, transform_indices = @transform_1, window_bounds = array<i64: 32, 2>}, {pipeline_mode = #tpu.pipeline_mode<synchronous>, transform_indices = @transform_2, window_bounds = array<i64: 1, 2>}, {pipeline_mode = #tpu.pipeline_mode<synchronous>, transform_indices = @transform_3, window_bounds = array<i64: 2, 32>}, {pipeline_mode = #tpu.pipeline_mode<synchronous>, transform_indices = @transform_4, window_bounds = array<i64: 1, 32>}, {transform_indices = @transform_5, window_bounds = array<i64: 1, 32, 256>}]} {
    %c0 = arith.constant 0 : index
    %c0_0 = arith.constant 0 : index
    %c0_1 = arith.constant 0 : index
    %0 = vector.load %arg1[%c0, %c0_0, %c0_1] : memref<1x32x256xf32, #tpu.memory_space<vmem>>, vector<1x32x256xf32>
    %cst = arith.constant dense<0.000000e+00> : vector<1x32xf32>
    %1 = vector.multi_reduction <add>, %0, %cst [2] : vector<1x32x256xf32> to vector<1x32xf32>
    %cst_2 = arith.constant 3.906250e-03 : f32
    %2 = vector.broadcast %cst_2 : f32 to vector<1x32xf32>
    %3 = arith.mulf %1, %2 : vector<1x32xf32>
    %c0_3 = arith.constant 0 : index
    %c0_4 = arith.constant 0 : index
    %4 = vector.load %arg2[%c0_3, %c0_4] : memref<32x2xf32, #tpu.memory_space<vmem>>, vector<32x2xf32>
    %cst_5 = arith.constant dense<0.000000e+00> : vector<1x2xf32>
    %5 = tpu.matmul %3, %4, %cst_5 {dimension_numbers = #tpu.dot_dimension_numbers<[1], [0], [0], [1], [0, 0, 1, 1], [], []>} : vector<1x32xf32>, vector<32x2xf32>, vector<1x2xf32> -> vector<1x2xf32>
    %c0_6 = arith.constant 0 : index
    %c0_7 = arith.constant 0 : index
    %6 = vector.load %arg3[%c0_6, %c0_7] : memref<1x2xf32, #tpu.memory_space<vmem>>, vector<1x2xf32>
    %7 = arith.addf %5, %6 : vector<1x2xf32>
    %cst_8 = arith.constant 0.000000e+00 : f32
    %8 = vector.broadcast %cst_8 : f32 to vector<1x2xf32>
    %9 = arith.maximumf %7, %8 : vector<1x2xf32>
    %c0_9 = arith.constant 0 : index
    %c0_10 = arith.constant 0 : index
    %10 = vector.load %arg4[%c0_9, %c0_10] : memref<2x32xf32, #tpu.memory_space<vmem>>, vector<2x32xf32>
    %cst_11 = arith.constant dense<0.000000e+00> : vector<1x32xf32>
    %11 = tpu.matmul %9, %10, %cst_11 {dimension_numbers = #tpu.dot_dimension_numbers<[1], [0], [0], [1], [0, 0, 1, 1], [], []>} : vector<1x2xf32>, vector<2x32xf32>, vector<1x32xf32> -> vector<1x32xf32>
    %c0_12 = arith.constant 0 : index
    %c0_13 = arith.constant 0 : index
    %12 = vector.load %arg5[%c0_12, %c0_13] : memref<1x32xf32, #tpu.memory_space<vmem>>, vector<1x32xf32>
    %13 = arith.addf %11, %12 : vector<1x32xf32>
    %14 = arith.negf %13 : vector<1x32xf32>
    %15 = math.exp %14 : vector<1x32xf32>
    %cst_14 = arith.constant 1.000000e+00 : f32
    %16 = vector.broadcast %cst_14 : f32 to vector<1x32xf32>
    %17 = arith.addf %16, %15 : vector<1x32xf32>
    %18 = arith.divf %16, %17 : vector<1x32xf32>
    %c0_15 = arith.constant 0 : index
    %c0_16 = arith.constant 0 : index
    %c0_17 = arith.constant 0 : index
    %19 = vector.load %arg1[%c0_15, %c0_16, %c0_17] : memref<1x32x256xf32, #tpu.memory_space<vmem>>, vector<1x32x256xf32>
    %20 = vector.shape_cast %18 : vector<1x32xf32> to vector<1x32x1xf32>
    %21 = vector.broadcast %20 : vector<1x32x1xf32> to vector<1x32x256xf32>
    %22 = arith.mulf %19, %21 : vector<1x32x256xf32>
    %c0_18 = arith.constant 0 : index
    %c0_19 = arith.constant 0 : index
    %c0_20 = arith.constant 0 : index
    %23 = vector.load %arg6[%c0_18, %c0_19, %c0_20] : memref<1x32x256xf32, #tpu.memory_space<vmem>>, vector<1x32x256xf32>
    tpu.vector_store %arg6[%c0_18, %c0_19, %c0_20], %22 {strides = array<i32>} : memref<1x32x256xf32, #tpu.memory_space<vmem>>, vector<1x32x256xf32>,
    return
  }
  func.func @transform_0(%arg0: i32) -> (i32, i32, i32) {
    %c0_i32 = arith.constant 0 : i32
    %c0_i32_0 = arith.constant 0 : i32
    %c0_i32_1 = arith.constant 0 : i32
    return %arg0, %c0_i32, %c0_i32_0 : i32, i32, i32
  }
  func.func @transform_1(%arg0: i32) -> (i32, i32) {
    %c0_i32 = arith.constant 0 : i32
    %c0_i32_0 = arith.constant 0 : i32
    %c0_i32_1 = arith.constant 0 : i32
    return %c0_i32, %c0_i32_0 : i32, i32
  }
  func.func @transform_2(%arg0: i32) -> (i32, i32) {
    %c0_i32 = arith.constant 0 : i32
    %c0_i32_0 = arith.constant 0 : i32
    %c0_i32_1 = arith.constant 0 : i32
    return %c0_i32, %c0_i32_0 : i32, i32
  }
  func.func @transform_3(%arg0: i32) -> (i32, i32) {
    %c0_i32 = arith.constant 0 : i32
    %c0_i32_0 = arith.constant 0 : i32
    %c0_i32_1 = arith.constant 0 : i32
    return %c0_i32, %c0_i32_0 : i32, i32
  }
  func.func @transform_4(%arg0: i32) -> (i32, i32) {
    %c0_i32 = arith.constant 0 : i32
    %c0_i32_0 = arith.constant 0 : i32
    %c0_i32_1 = arith.constant 0 : i32
    return %c0_i32, %c0_i32_0 : i32, i32
  }
  func.func @transform_5(%arg0: i32) -> (i32, i32, i32) {
    %c0_i32 = arith.constant 0 : i32
    %c0_i32_0 = arith.constant 0 : i32
    %c0_i32_1 = arith.constant 0 : i32
    return %arg0, %c0_i32, %c0_i32_0 : i32, i32, i32
  }
}

</mosaic_0001>

<bundles_post_ra>
// kernel: channel_attention.1
= control target key start
LH: loop header
LB: loop body
LE: loop exit
PB: predicated region body
PF: predicated region fallthrough
CT: control target
= control target key end

     0   :  { %s629_s18 = smov 0   ;;  %s706_s0 = inlined_call_operand.vmem [shape: f32[2,32,256], index: 0, kind: input, shape index: {}]   ;;  %s707_s1 = inlined_call_operand.vmem [shape: f32[32,2], index: 1, kind: input, shape index: {}]   ;;  %s708_s2 = inlined_call_operand.vmem [shape: f32[1,2], index: 2, kind: input, shape index: {}]   ;;  %s709_s3 = inlined_call_operand.vmem [shape: f32[2,32], index: 3, kind: input, shape index: {}]   ;;  %s710_s4 = inlined_call_operand.vmem [shape: f32[1,32], index: 4, kind: input, shape index: {}]   ;;  %s711_s5 = inlined_call_operand.vmem [shape: f32[2,32,256], index: 5, kind: output, shape index: {}]  }
   0x1 LB: > { %s535_s19 = sadd.s32 4294967295, %s595_s18   ;;  %p539_p0 = scmp.ge.s32.totalorder %s595_s18, 1  ;;  %s595_s18 = sphi %s629_s18, %s15_s18  }
   0x2   : > { %p187_p1 = scmp.lt.s32.totalorder %s595_s18, 3 }
   0x4   : > { %p188_p2 = pnand %p539_p0, %p187_p1 }
   0x5   : > { %p215_p3 = scmp.lt.s32.totalorder (!%p188_p2), %s535_s19, 1 }
   0x6   : > { %191 = sbr.rel (%p188_p2) target bundleno = 718 (0x2ce), region = 40 }
   0xb   : > { %s713_s19 = smov (!%p215_p3, %s535_s19), 1  ;;  %v597_v12 = vmov 0.0   ;;  %v252_v13 = vld [vmem:[%s707_s1 + $0x18] sm:$0xff]  ;;  %v251_v14 = vld [vmem:[%s707_s1 + $0x10] sm:$0xff]  ;;  %v250_v15 = vld [vmem:[%s707_s1 + $0x8] sm:$0xff]  ;;  %vm598_vm0 = vmmov 0   ;;  %v258_v17 = vlaneseq }
   0xc   : > { %s550_s20 = sshll.u32 %s713_s19, 6  ;;  %559 = vmatprep.subr.mxu0 %v597_v12  ;;  %570 = vmatprep.subr.mxu1 %v597_v12  ;;  %v249_v16 = vld [vmem:[%s707_s1] sm:$0xff]  ;;  %vm269_vm1 = vcmask 130112   ;;  %vm276_vm2 = vcmask 195712   ;;  %vm283_vm3 = vcmask 261312   ;;  %vm285_vm4 = vcmask 261120  }
   0xd   : > { %s219_s23 = scalar_lea.vmem %s706_s0, %s550_s20  ;;  %560 = vmatpush3.msra.mxu0 %v252_v13  ;;  %567 = vmatprep.mubr.msk.f32.mxu0 %vm598_vm0, %v597_v12  ;;  %v259_v18 = vand.u32 127, %v258_v17  ;;  %v261_v19 = vshrl.u32 %v258_v17, 7  ;;  %v359_v42 = vld [vmem:[%s709_s3] sm:$0x3]  ;;  %vm365_vm5 = vcmask 1041408   ;;  %vm361_vm6 = vcmask 15360   ;;  %s224_s15 = scalar_lea.vmem %s711_s5, %s550_s20 }
   0xe   : > { %v645_v0 = vld [vmem:[%s219_s23] sm:$0xff]  ;;  %v647_v1 = vld [vmem:[%s219_s23 + $0x8] sm:$0xff]  ;;  %v655_v5 = vld [vmem:[%s219_s23 + $0x10] sm:$0xff]  ;;  %561 = vmatprep.subr.mxu0 %v597_v12  ;;  %572 = vmatprep.mubr.msk.f32.mxu1 %vm598_vm0, %v597_v12 }
   0xf   : > { %v649_v2 = vld [vmem:[%s219_s23 + $0x20] sm:$0xff]  ;;  %v233_v3 = vadd.f32 %v647_v1, %v645_v0  ;;  %v653_v4 = vld [vmem:[%s219_s23 + $0x28] sm:$0xff]  ;;  %v657_v6 = vld [vmem:[%s219_s23 + $0x18] sm:$0xff]  ;;  %562 = vmatpush3.msra.mxu0 %v251_v14  ;;  %v264_v20 = vadd.s32 4294967288, %v259_v18  ;;  %v271_v22 = vadd.s32 4294967280, %v259_v18  ;;  %v278_v23 = vadd.s32 4294967272, %v259_v18  ;;  %571 = vmatpush3.msk.msra.mxu1 %vm365_vm5, %v359_v42 }
  0x10   : > { %v239_v7 = vadd.f32 %v653_v4, %v649_v2  ;;  %v661_v8 = vld [vmem:[%s219_s23 + $0x30] sm:$0xff]  ;;  %v663_v9 = vld [vmem:[%s219_s23 + $0x38] sm:$0xff]  ;;  %v236_v10 = vadd.f32 %v657_v6, %v655_v5  ;;  %563 = vmatprep.subr.mxu0 %v597_v12  ;;  %v262_v25 = vsub.s32 %v259_v18, %v261_v19  ;;  %v253_v43 = vld [vmem:[%s708_s2] sm:$0x1]  ;;  %v447_v55 = vsub.s32 0, %v261_v19 }
  0x11   : > { %234 = vadd.xlane.f32.xlu0 %v233_v3  ;;  %v242_v11 = vadd.f32 %v663_v9, %v661_v8  ;;  %564 = vmatpush3.msra.mxu0 %v250_v15  ;;  %v267_v27 = vsub.s32 %v264_v20, %v261_v19  ;;  %v274_v28 = vsub.s32 %v271_v22, %v261_v19  ;;  %v360_v48 = vld [vmem:[%s710_s4] sm:$0x1] }
  0x12   : > { %240 = vadd.xlane.f32.xlu1 %v239_v7  ;;  %565 = vmatprep.subr.mxu0 %v597_v12  ;;  %v281_v31 = vsub.s32 %v278_v23, %v261_v19 }
  0x13   : > { %566 = vmatpush3.msra.mxu0 %v249_v16 }
  0x15   : > { %237 = vadd.xlane.f32.xlu0 %v236_v10 }
  0x16   : > { %243 = vadd.xlane.f32.xlu1 %v242_v11 }
  0x9a   : > { %v235_v21 = vpop.xlane.xlu0 %234 }
  0x9b   : > { %v241_v24 = vpop.xlane.xlu1 %240  ;;  %v245_v26 = vmul.f32 0.00390625, %v235_v21 }
  0x9c   : > { %v247_v29 = vmul.f32 0.00390625, %v241_v24 }
  0x9d   : > { %v263_v35 = vrot.slane %v245_v26, %v262_v25 }
  0x9e   : > { %v238_v30 = vpop.xlane.xlu0 %237  ;;  %v275_v37 = vrot.slane %v247_v29, %v274_v28 }
  0x9f   : > { %v246_v32 = vmul.f32 0.00390625, %v238_v30  ;;  %v244_v33 = vpop.xlane.xlu1 %243 }
  0xa0   : > { %v248_v34 = vmul.f32 0.00390625, %v244_v33 }
  0xa1   : > { %v268_v36 = vrot.slane %v246_v32, %v267_v27 }
  0xa2   : > { %v282_v38 = vrot.slane %v248_v34, %v281_v31 }
  0xa3   : > { %v270_v39 = vsel %vm269_vm1, %v268_v36, %v263_v35 }
  0xa4   : > { %v277_v40 = vsel %vm276_vm2, %v275_v37, %v270_v39 }
  0xa5   : > { %v284_v41 = vsel %vm283_vm3, %v282_v38, %v277_v40 }
  0xa6   : > { %568 = vmatmul.mubr.msk.f32.vlgmr.msra.gmra.mxu0 %vm285_vm4, %v284_v41 }
 0x166   : > { %v354_v44 = vpop.f32.mrf.mxu0 }
 0x167   : > { %v355_v45 = vadd.f32 %v354_v44, %v253_v43 }
 0x168   : > { %v569_v46 = vpop.f32.mrf.mxu0 }
 0x169   : > { %v358_v47 = vmax.f32 %v355_v45, 0.0 }
 0x16b   : > { %573 = vmatmul.mubr.msk.f32.vlgmr.msra.gmra.mxu1 %vm361_vm6, %v358_v47 }
 0x22b   : > { %v435_v49 = vpop.f32.mrf.mxu1 }
 0x22c   : > { %v436_v50 = vadd.f32 %v435_v49, %v360_v48 }
 0x22d   : > { %v574_v51 = vpop.f32.mrf.mxu1 }
 0x22e   : > { %v547_v52 = vmul.f32 -1.442695, %v436_v50 }
 0x230   : > { %585 = vpow2.f32 %v547_v52 }
 0x23d   : > { %v586_v53 = vpop.eup %585 }
 0x23e   : > { %v442_v54 = vadd.f32 1.0, %v586_v53 }
 0x240   : > { %587 = vrcp.f32 %v442_v54 }
 0x24d   : > { %v588_v56 = vpop.eup %587 }
 0x24e   : > { %v448_v57 = vrot.slane %v588_v56, %v447_v55 }
 0x250   : > { %454 = vbcast.lane.b32.xlu1 %v448_v57, 264  ;;  %450 = vbcast.lane.b32.xlu0 %v448_v57, 256 }
 0x254   : > { %458 = vbcast.lane.b32.xlu1 %v448_v57, 272 }
 0x258   : > { %462 = vbcast.lane.b32.xlu1 %v448_v57, 280 }
 0x2c2   : > { %v455_v58 = vpop.permute.xlu1 %454  ;;  %v451_v59 = vpop.permute.xlu0 %450 }
 0x2c3   : > { %v466_v60 = vmul.f32 %v455_v58, %v655_v5  ;;  %v467_v61 = vmul.f32 %v455_v58, %v657_v6  ;;  %v464_v62 = vmul.f32 %v451_v59, %v645_v0  ;;  %v465_v63 = vmul.f32 %v451_v59, %v647_v1 }
 0x2c5   : > { %474 = vst [vmem:[%s224_s15 + $0x10] sm:$0xff] %v466_v60  ;;  %475 = vst [vmem:[%s224_s15 + $0x18] sm:$0xff] %v467_v61 }
 0x2c6   : > { %472 = vst [vmem:[%s224_s15] sm:$0xff] %v464_v62  ;;  %473 = vst [vmem:[%s224_s15 + $0x8] sm:$0xff] %v465_v63  ;;  %v459_v3 = vpop.permute.xlu1 %458 }
 0x2c7   : > { %v468_v7 = vmul.f32 %v459_v3, %v649_v2  ;;  %v469_v10 = vmul.f32 %v459_v3, %v653_v4 }
 0x2c9   : > { %476 = vst [vmem:[%s224_s15 + $0x20] sm:$0xff] %v468_v7  ;;  %477 = vst [vmem:[%s224_s15 + $0x28] sm:$0xff] %v469_v10 }
 0x2ca   : > { %v463_v11 = vpop.permute.xlu1 %462 }
 0x2cb   : > { %v470_v5 = vmul.f32 %v463_v11, %v661_v8  ;;  %v471_v6 = vmul.f32 %v463_v11, %v663_v9 }
 0x2cd   : > { %478 = vst [vmem:[%s224_s15 + $0x30] sm:$0xff] %v470_v5  ;;  %479 = vst [vmem:[%s224_s15 + $0x38] sm:$0xff] %v471_v6 }
 0x2ce PF: > { %s15_s18 = sadd.s32 1, %s595_s18  }
 0x2cf   : > { %p12_p4 = scmp.ge.s32.totalorder %s15_s18, 4  }
 0x2d1   :  { %14 = sbr.rel (!%p12_p4) target bundleno = 1 (0x1), region = 70 }

</bundles_post_ra>
